<compile_context>
chip_gen: v5e
topology: v5e:2x2
jax: 0.10.0
libtpu: 0.0.40
codegen_flags: <defaults>
</compile_context>

<pallas_src>
import jax
import jax.numpy as jnp
from jax import lax
from jax.experimental import pallas as pl
from jax.experimental.pallas import tpu as pltpu

_BN_EPS = 1e-5


# ----------------------------------------------------------------------------
# Kernel
# ----------------------------------------------------------------------------
def _glu_kernel(x_ref, w_ref, p_ref, o_ref):
    """One feature tile: out = BN(x @ W_a) * sigmoid(BN(x @ W_g)).

    x_ref: (B, F_in)     f32 activations (cast to bf16 in-kernel)
    w_ref: (F_in, 2*th)  bf16 fused weight tile  [W_a tile | W_g tile]
    p_ref: (4, th)       f32 packed BN params [gamma_a; gamma_g; beta_a; beta_g]
    o_ref: (B, th)       output tile
    """
    th = o_ref.shape[-1]
    # In-kernel bf16 cast: avoids a separate host-side XLA pass over x in HBM.
    x = x_ref[...].astype(jnp.bfloat16)                 # (B, F_in)
    inv_b = 1.0 / x.shape[0]                            # static python float

    # One fused MXU matmul for both GLU halves, f32 accumulation.
    y = jnp.dot(x, w_ref[...], preferred_element_type=jnp.float32)  # (B, 2*th)
    y_a = y[:, :th]          # th is a multiple of 128 -> lane-aligned, free
    y_g = y[:, th:]
    # NOTE: the Linear bias is intentionally omitted -- training-mode BatchNorm
    # subtracts the batch mean, so a per-feature constant cancels exactly.

    p = p_ref[...]                                      # (4, th)
    gamma_a, gamma_g = p[0:1, :], p[1:2, :]
    beta_a, beta_g = p[2:3, :], p[3:4, :]

    def batchnorm(yh, gamma, beta):
        # Single-pass batch statistics (biased variance == torch training mode),
        # folded into one per-feature FMA over (B, th).
        # TODO(synk): use a shifted/two-pass variance if activations can have
        # |mean| >> std (catastrophic-cancellation guard).
        s = jnp.sum(yh, axis=0, keepdims=True)          # (1, th)
        ss = jnp.sum(yh * yh, axis=0, keepdims=True)    # (1, th)
        mean = s * inv_b
        var = ss * inv_b - mean * mean
        inv = lax.rsqrt(var + _BN_EPS)
        scale = gamma * inv                             # tiny (1, th) work
        shift = beta - mean * scale
        return yh * scale + shift                       # one FMA pass

    a = batchnorm(y_a, gamma_a, beta_a)
    g = batchnorm(y_g, gamma_g, beta_g)
    # sigmoid(g) = 1 / (1 + exp(-g)); approx reciprocal stays on the EUP slot.
    gate = pl.reciprocal(1.0 + jnp.exp(-g), approx=True)
    o_ref[...] = (a * gate).astype(o_ref.dtype)


# ----------------------------------------------------------------------------
# Host-side helpers
# ----------------------------------------------------------------------------
def _pick_feature_tile(h_padded):
    # Prefer MXU-wide (>=256) tiles AND >=2 tiles so the "parallel" grid axis
    # can split across v7x's two TensorCores; otherwise take the largest
    # 128-multiple tile (fewer ~0.35us grid steps on single-TC v5e/v6e).
    for cand in (1024, 512, 256):
        if h_padded % cand == 0 and h_padded // cand >= 2:
            return cand
    for cand in (1024, 512, 256, 128):
        if h_padded % cand == 0:
            return cand
    return h_padded  # unreachable: h_padded is always a multiple of 128


def prepare_glu_params(weight, gamma, beta, *, feature_tile=None):
    """One-time parameter prep (hoist out of the training/inference step).

    Returns (w_fused, p_packed, H, Hp, th) where
      w_fused : (F_in, 2*Hp) bf16, tile j = [W_a tile j | W_g tile j]
      p_packed: (4, Hp) f32, rows = [gamma_a, gamma_g, beta_a, beta_g]
    """
    F_out, F_in = weight.shape
    assert F_out % 2 == 0, "GLU requires an even output_size"
    H = F_out // 2

    # Pad the per-half feature dim to a multiple of 128 so every output store
    # is lane-dense; padded columns produce exact zeros and are sliced off.
    Hp = pl.cdiv(H, 128) * 128
    pad = Hp - H

    th = feature_tile if feature_tile is not None else _pick_feature_tile(Hp)
    assert Hp % th == 0 and th % 128 == 0
    nT = Hp // th

    w_t = weight.T.astype(jnp.bfloat16)                 # (F_in, F_out), bf16 MXU
    w_a, w_g = w_t[:, :H], w_t[:, H:]
    g_a, g_g = gamma[:H], gamma[H:]
    b_a, b_g = beta[:H], beta[H:]
    if pad:
        w_a = jnp.pad(w_a, ((0, 0), (0, pad)))          # zero cols -> zero y
        w_g = jnp.pad(w_g, ((0, 0), (0, pad)))
        g_a = jnp.pad(g_a, (0, pad), constant_values=1.0)
        g_g = jnp.pad(g_g, (0, pad), constant_values=1.0)
        b_a = jnp.pad(b_a, (0, pad))
        b_g = jnp.pad(b_g, (0, pad))

    # Per-tile interleave so one (F_in, 2*th) block carries both GLU halves.
    w_fused = jnp.concatenate(
        [w_a.reshape(F_in, nT, th), w_g.reshape(F_in, nT, th)], axis=2
    ).reshape(F_in, 2 * Hp)

    # Four tiny BN vectors collapsed into a single DMA-able block.
    p_packed = jnp.stack([g_a, g_g, b_a, b_g], axis=0).astype(jnp.float32)

    return w_fused, p_packed, H, Hp, th


def _vmem_limit_bytes(B, F_in, th):
    # Budget from the actual (double-buffered) block footprints plus matmul /
    # BN intermediates, clamped generation-aware (v7x has only 64 MiB VMEM).
    x_block = B * F_in * 4                 # f32 input block
    w_block = F_in * 2 * th * 2            # bf16 fused weight block
    p_block = 4 * th * 4                   # packed BN params
    o_block = B * th * 4                   # f32 output block
    interm = B * 2 * th * 4 + 2 * B * th * 4  # y + a/g working values
    need = 2 * (x_block + w_block + p_block + o_block) + interm
    need = int(need * 1.5) + (4 << 20)     # headroom for compiler scratch
    try:
        phys = pltpu.get_tpu_info().vmem_capacity_bytes
    except Exception:
        phys = 64 << 20                    # conservative (v7x per-TC VMEM)
    cap = int(phys * 0.75)
    return max(32 << 20, min(need, cap))


def _glu_pallas(x, w_fused, p_packed, *, Hp, th):
    B, F_in = x.shape
    grid = (Hp // th,)

    # x is grid-invariant (constant index_map): Pallas DMAs it once and
    # reuses the buffer across feature tiles.
    x_spec = pl.BlockSpec((B, F_in), lambda j: (0, 0))
    w_spec = pl.BlockSpec((F_in, 2 * th), lambda j: (0, j))
    p_spec = pl.BlockSpec((4, th), lambda j: (0, j))
    o_spec = pl.BlockSpec((B, th), lambda j: (0, j))

    return pl.pallas_call(
        _glu_kernel,
        out_shape=jax.ShapeDtypeStruct((B, Hp), x.dtype),
        grid_spec=pltpu.PrefetchScalarGridSpec(
            num_scalar_prefetch=0,
            grid=grid,
            in_specs=[x_spec, w_spec, p_spec],
            out_specs=o_spec,
        ),
        compiler_params=pltpu.CompilerParams(
            # Feature tiles are fully independent (BN stats are per-feature):
            # "parallel" lets v7x split them across its two TensorCores.
            dimension_semantics=("parallel",),
            vmem_limit_bytes=_vmem_limit_bytes(B, F_in, th),
        ),
    )(x, w_fused, p_packed)


def glu_layer(x, weight, bias, gamma, beta, *, feature_tile=None):
    """TabNet GLULayer forward: GLU(BatchNorm1d(Linear(x))), training-mode BN.

    x:      (B, F_in)      float32 activations
    weight: (F_out, F_in)  nn.Linear weight (PyTorch layout)
    bias:   (F_out,)       nn.Linear bias (cancels under batch-norm; accepted
                           for API fidelity but unused)
    gamma:  (F_out,)       BatchNorm1d weight
    beta:   (F_out,)       BatchNorm1d bias
    returns (B, F_out // 2) float32
    """
    del bias  # mathematically cancelled by the batch-mean subtraction
    w_fused, p_packed, H, Hp, th = prepare_glu_params(
        weight, gamma, beta, feature_tile=feature_tile)
    out = _glu_pallas(x, w_fused, p_packed, Hp=Hp, th=th)
    return out[:, :H] if Hp != H else out


# ----------------------------------------------------------------------------
# Pure-JAX reference: Linear -> training-mode BatchNorm1d -> GLU
# ----------------------------------------------------------------------------
def _reference(x, weight, bias, gamma, beta, *, matmul_dtype=jnp.float32):
    y = jnp.dot(x.astype(matmul_dtype), weight.T.astype(matmul_dtype),
                preferred_element_type=jnp.float32) + bias
    mean = jnp.mean(y, axis=0, keepdims=True)
    var = jnp.mean((y - mean) ** 2, axis=0, keepdims=True)
    y = (y - mean) / jnp.sqrt(var + _BN_EPS) * gamma + beta
    h = y.shape[-1] // 2
    return y[:, :h] * jax.nn.sigmoid(y[:, h:])


if __name__ == "__main__":
    key = jax.random.PRNGKey(0)

    def make_case(k, B, F_in, F_out):
        k_x, k_w, k_b, k_g, k_bt = jax.random.split(k, 5)
        x = jax.random.normal(k_x, (B, F_in), dtype=jnp.float32)
        xavier = (6.0 / (F_in + F_out)) ** 0.5
        weight = jax.random.uniform(k_w, (F_out, F_in), jnp.float32,
                                    minval=-xavier, maxval=xavier)
        bias = jax.random.uniform(k_b, (F_out,), jnp.float32,
                                  minval=-1.0 / F_in ** 0.5,
                                  maxval=1.0 / F_in ** 0.5)
        gamma = jax.random.uniform(k_g, (F_out,), jnp.float32,
                                   minval=0.5, maxval=1.5)
        beta = 0.1 * jax.random.normal(k_bt, (F_out,), dtype=jnp.float32)
        return x, weight, bias, gamma, beta

    k1, k2 = jax.random.split(key)

    # Case 1: lane-aligned half (H = 512) -> auto tile 256, 2-step parallel grid.
    x, w, b, g, bt = make_case(k1, 64, 64, 1024)
    out = jax.block_until_ready(glu_layer(x, w, b, g, bt))
    assert out.shape == (64, 512)
    ref_bf = _reference(x, w, b, g, bt, matmul_dtype=jnp.bfloat16)
    ref_f32 = _reference(x, w, b, g, bt, matmul_dtype=jnp.float32)
    assert jnp.allclose(out, ref_bf, atol=2e-2, rtol=2e-2), \
        float(jnp.max(jnp.abs(out - ref_bf)))
    assert jnp.allclose(out, ref_f32, atol=1e-1, rtol=1e-1), \
        float(jnp.max(jnp.abs(out - ref_f32)))

    # Case 2: non-128-multiple half (H = 96, typical TabNet width) -> padded
    # to 128 lanes in-kernel, padded columns sliced off the output.
    x, w, b, g, bt = make_case(k2, 32, 40, 192)
    out = jax.block_until_ready(glu_layer(x, w, b, g, bt))
    assert out.shape == (32, 96)
    ref_bf = _reference(x, w, b, g, bt, matmul_dtype=jnp.bfloat16)
    assert jnp.allclose(out, ref_bf, atol=2e-2, rtol=2e-2), \
        float(jnp.max(jnp.abs(out - ref_bf)))

    print("KERNEL_OK")
</pallas_src>

<mosaic_0001>
module attributes {stable_mosaic.version = 11 : i64} {
  func.func @_glu_kernel(%arg0: i32, %arg1: memref<64x64xf32, #tpu.memory_space<vmem>>, %arg2: memref<64x512xbf16, #tpu.memory_space<vmem>>, %arg3: memref<4x256xf32, #tpu.memory_space<vmem>>, %arg4: memref<64x256xf32, #tpu.memory_space<vmem>>) attributes {dimension_semantics = [#tpu.dimension_semantics<parallel>], iteration_bounds = array<i64: 2>, scalar_prefetch = 0 : i64, scratch_operands = 0 : i64, tpu.core_type = #tpu.core_type<tc>, window_params = [{pipeline_mode = #tpu.pipeline_mode<synchronous>, transform_indices = @transform_0, window_bounds = array<i64: 64, 64>}, {transform_indices = @transform_1, window_bounds = array<i64: 64, 512>}, {transform_indices = @transform_2, window_bounds = array<i64: 4, 256>}, {transform_indices = @transform_3, window_bounds = array<i64: 64, 256>}]} {
    %c0 = arith.constant 0 : index
    %c0_0 = arith.constant 0 : index
    %0 = vector.load %arg1[%c0, %c0_0] : memref<64x64xf32, #tpu.memory_space<vmem>>, vector<64x64xf32>
    %1 = arith.truncf %0 : vector<64x64xf32> to vector<64x64xbf16>
    %c0_1 = arith.constant 0 : index
    %c0_2 = arith.constant 0 : index
    %2 = vector.load %arg2[%c0_1, %c0_2] : memref<64x512xbf16, #tpu.memory_space<vmem>>, vector<64x512xbf16>
    %cst = arith.constant dense<0.000000e+00> : vector<64x512xf32>
    %3 = tpu.matmul %1, %2, %cst {dimension_numbers = #tpu.dot_dimension_numbers<[1], [0], [0], [1], [0, 0, 1, 1], [], []>} : vector<64x64xbf16>, vector<64x512xbf16>, vector<64x512xf32> -> vector<64x512xf32>
    %4 = vector.extract_strided_slice %3 {offsets = [0, 0], sizes = [64, 256], strides = [1, 1]} : vector<64x512xf32> to vector<64x256xf32>
    %5 = vector.extract_strided_slice %3 {offsets = [0, 256], sizes = [64, 256], strides = [1, 1]} : vector<64x512xf32> to vector<64x256xf32>
    %c0_3 = arith.constant 0 : index
    %c0_4 = arith.constant 0 : index
    %6 = vector.load %arg3[%c0_3, %c0_4] : memref<4x256xf32, #tpu.memory_space<vmem>>, vector<4x256xf32>
    %7 = vector.extract_strided_slice %6 {offsets = [0, 0], sizes = [1, 256], strides = [1, 1]} : vector<4x256xf32> to vector<1x256xf32>
    %8 = vector.extract_strided_slice %6 {offsets = [1, 0], sizes = [1, 256], strides = [1, 1]} : vector<4x256xf32> to vector<1x256xf32>
    %9 = vector.extract_strided_slice %6 {offsets = [2, 0], sizes = [1, 256], strides = [1, 1]} : vector<4x256xf32> to vector<1x256xf32>
    %10 = vector.extract_strided_slice %6 {offsets = [3, 0], sizes = [1, 256], strides = [1, 1]} : vector<4x256xf32> to vector<1x256xf32>
    %cst_5 = arith.constant dense<0.000000e+00> : vector<256xf32>
    %11 = vector.multi_reduction <add>, %4, %cst_5 [0] : vector<64x256xf32> to vector<256xf32>
    %12 = vector.shape_cast %11 : vector<256xf32> to vector<1x256xf32>
    %13 = arith.mulf %4, %4 : vector<64x256xf32>
    %cst_6 = arith.constant dense<0.000000e+00> : vector<256xf32>
    %14 = vector.multi_reduction <add>, %13, %cst_6 [0] : vector<64x256xf32> to vector<256xf32>
    %15 = vector.shape_cast %14 : vector<256xf32> to vector<1x256xf32>
    %cst_7 = arith.constant 1.562500e-02 : f32
    %16 = vector.broadcast %cst_7 : f32 to vector<1x256xf32>
    %17 = arith.mulf %12, %16 : vector<1x256xf32>
    %cst_8 = arith.constant 1.562500e-02 : f32
    %18 = vector.broadcast %cst_8 : f32 to vector<1x256xf32>
    %19 = arith.mulf %15, %18 : vector<1x256xf32>
    %20 = arith.mulf %17, %17 : vector<1x256xf32>
    %21 = arith.subf %19, %20 : vector<1x256xf32>
    %cst_9 = arith.constant 9.99999974E-6 : f32
    %22 = vector.broadcast %cst_9 : f32 to vector<1x256xf32>
    %23 = arith.addf %21, %22 : vector<1x256xf32>
    %24 = math.rsqrt %23 : vector<1x256xf32>
    %25 = arith.mulf %7, %24 : vector<1x256xf32>
    %26 = arith.mulf %17, %25 : vector<1x256xf32>
    %27 = arith.subf %9, %26 : vector<1x256xf32>
    %28 = vector.broadcast %25 : vector<1x256xf32> to vector<64x256xf32>
    %29 = arith.mulf %4, %28 : vector<64x256xf32>
    %30 = vector.broadcast %27 : vector<1x256xf32> to vector<64x256xf32>
    %31 = arith.addf %29, %30 : vector<64x256xf32>
    %cst_10 = arith.constant dense<0.000000e+00> : vector<256xf32>
    %32 = vector.multi_reduction <add>, %5, %cst_10 [0] : vector<64x256xf32> to vector<256xf32>
    %33 = vector.shape_cast %32 : vector<256xf32> to vector<1x256xf32>
    %34 = arith.mulf %5, %5 : vector<64x256xf32>
    %cst_11 = arith.constant dense<0.000000e+00> : vector<256xf32>
    %35 = vector.multi_reduction <add>, %34, %cst_11 [0] : vector<64x256xf32> to vector<256xf32>
    %36 = vector.shape_cast %35 : vector<256xf32> to vector<1x256xf32>
    %cst_12 = arith.constant 1.562500e-02 : f32
    %37 = vector.broadcast %cst_12 : f32 to vector<1x256xf32>
    %38 = arith.mulf %33, %37 : vector<1x256xf32>
    %cst_13 = arith.constant 1.562500e-02 : f32
    %39 = vector.broadcast %cst_13 : f32 to vector<1x256xf32>
    %40 = arith.mulf %36, %39 : vector<1x256xf32>
    %41 = arith.mulf %38, %38 : vector<1x256xf32>
    %42 = arith.subf %40, %41 : vector<1x256xf32>
    %cst_14 = arith.constant 9.99999974E-6 : f32
    %43 = vector.broadcast %cst_14 : f32 to vector<1x256xf32>
    %44 = arith.addf %42, %43 : vector<1x256xf32>
    %45 = math.rsqrt %44 : vector<1x256xf32>
    %46 = arith.mulf %8, %45 : vector<1x256xf32>
    %47 = arith.mulf %38, %46 : vector<1x256xf32>
    %48 = arith.subf %10, %47 : vector<1x256xf32>
    %49 = vector.broadcast %46 : vector<1x256xf32> to vector<64x256xf32>
    %50 = arith.mulf %5, %49 : vector<64x256xf32>
    %51 = vector.broadcast %48 : vector<1x256xf32> to vector<64x256xf32>
    %52 = arith.addf %50, %51 : vector<64x256xf32>
    %cst_15 = arith.constant 0.000000e+00 : f32
    %53 = vector.broadcast %cst_15 : f32 to vector<64x256xf32>
    %54 = arith.subf %53, %52 : vector<64x256xf32>
    %55 = math.exp %54 : vector<64x256xf32>
    %cst_16 = arith.constant 1.000000e+00 : f32
    %56 = vector.broadcast %cst_16 : f32 to vector<64x256xf32>
    %57 = arith.addf %56, %55 : vector<64x256xf32>
    %58 = tpu.reciprocal %57 {approx = true} : vector<64x256xf32> -> vector<64x256xf32>
    %59 = arith.mulf %31, %58 : vector<64x256xf32>
    %c0_17 = arith.constant 0 : index
    %c0_18 = arith.constant 0 : index
    %60 = vector.load %arg4[%c0_17, %c0_18] : memref<64x256xf32, #tpu.memory_space<vmem>>, vector<64x256xf32>
    tpu.vector_store %arg4[%c0_17, %c0_18], %59 {strides = array<i32>} : memref<64x256xf32, #tpu.memory_space<vmem>>, vector<64x256xf32>,
    return
  }
  func.func @transform_0(%arg0: i32) -> (i32, i32) {
    %c0_i32 = arith.constant 0 : i32
    %c0_i32_0 = arith.constant 0 : i32
    %c0_i32_1 = arith.constant 0 : i32
    return %c0_i32, %c0_i32_0 : i32, i32
  }
  func.func @transform_1(%arg0: i32) -> (i32, i32) {
    %c0_i32 = arith.constant 0 : i32
    %c0_i32_0 = arith.constant 0 : i32
    return %c0_i32, %arg0 : i32, i32
  }
  func.func @transform_2(%arg0: i32) -> (i32, i32) {
    %c0_i32 = arith.constant 0 : i32
    %c0_i32_0 = arith.constant 0 : i32
    return %c0_i32, %arg0 : i32, i32
  }
  func.func @transform_3(%arg0: i32) -> (i32, i32) {
    %c0_i32 = arith.constant 0 : i32
    %c0_i32_0 = arith.constant 0 : i32
    return %c0_i32, %arg0 : i32, i32
  }
}

</mosaic_0001>

<bundles_post_ra>
// kernel: tpu_custom_call.1
= control target key start
LH: loop header
LB: loop body
LE: loop exit
PB: predicated region body
PF: predicated region fallthrough
CT: control target
= control target key end

     0   :  { %s2020_s0 = inlined_call_operand.hbm [shape: f32[64,64], index: 0, kind: input, shape index: {}]   ;;  %s2021_s1 = inlined_call_operand.hbm [shape: bf16[64,1024], index: 1, kind: input, shape index: {}]   ;;  %s2022_s2 = inlined_call_operand.hbm [shape: f32[4,512], index: 2, kind: input, shape index: {}]   ;;  %s2023_s3 = inlined_call_operand.hbm [shape: f32[64,512], index: 3, kind: output, shape index: {}]  }
   0x1   :  { %2025 = sst [smem:[#allocation13_spill]] %s2020_s0 }
   0x2   :  { %2026 = sst [smem:[#allocation14_spill]] %s2021_s1 }
   0x3   :  { %8 = vsyncpa [#allocation3], 0 }
   0x4   :  { %9 = vsyncpa [#allocation6], 0 }
   0x5   :  { %11 = vsyncpa [#allocation6 + $0x1], 0 }
   0x6   :  { %12 = vsyncpa [#allocation4], 0 }
   0x7   :  { %14 = vsyncpa [#allocation4 + $0x1], 0  ;;  %s1492_s12 = smov 0   ;;  %s1494_s13 = smov 0  }
   0x8   :  { %s1496_s14 = smov 0   ;;  %s1498_s15 = smov 0  }
   0x9 LB: > { %s1513_s16 = sadd.s32 1, %s1461_s15   ;;  %s48_s17 = sadd.s32 1, %s1457_s14  ;;  %s1461_s15 = sphi %s1498_s15, %s2040_s15   ;;  %s1457_s14 = sphi %s1496_s14, %s2039_s14   ;;  %s1453_s13 = sphi %s1494_s13, %s2038_s13   ;;  %s1449_s12 = sphi %s1492_s12, %s2037_s12  }
   0xa   : > { %s45_s18 = ssub.s32 %s1461_s15, %s1513_s16  ;;  %p55_p0 = scmp.ne.s32.totalorder %s1457_s14, %s1453_s13 }
   0xb   : > { %p46_p1 = scmp.eq.s32.totalorder %s45_s18, 0  ;;  %p56_p2 = scmp.eq.s32.totalorder %s1461_s15, 0 }
   0xc   : > { %p1185_p4 = scmp.lt.s32.totalorder %s1461_s15, 2  ;;  %s151_s20 = sand.u32 1, %s1461_s15  }
   0xd   : > { %s1524_s19 = scalar_select %p46_p1, %s1457_s14, %s48_s17  }
   0xe   : > { %p57_p5 = por %p56_p2, %p55_p0  ;;  %s153_s21 = sand.u32 1, %s1457_s14  }
   0xf   : > { %s1044_s22 = sshll.u32 %s153_s21, 7  ;;  %s1140_s23 = sshll.u32 %s1461_s15, 4 }
  0x10   : > { %s2027_s1 = sld [smem:[#allocation14_spill]]  ;;  %s155_s28 = scalar_lea.vmem [#allocation5], %s1044_s22 }
  0x11   : > { %s163_s29 = sshll.u32 %s155_s28, 4  ;;  %p1539_p6 = pnand %p1185_p4, %p57_p5  ;;  %s164_s29 = int_to_ptr.vmem [resolvable:$true] %s163_s29 }
  0x12   : > { %s1543_s4 = scalar_lea.sflag [#allocation6], %s151_s20 }
  0x13   : > { %p1305_p8 = pneg %p1539_p6 }
  0x16   : > { %s160_s26 = scalar_lea.hbm %s2027_s1, %s1140_s23  ;;  %s1308_s9 = scalar_lea.hbm %s2027_s1, 256 }
  0x17   : > { %s161_s27 = sshll.u32 %s160_s26, 4  ;;  %s162_s27 = int_to_ptr.hbm [resolvable:$true] %s161_s27 }
  0x18   : > { %s1301_s5 = sshra.s32 %s162_s27, 4  ;;  %s1302_s5 = int_to_ptr.hbm [resolvable:$true] %s1301_s5 }
  0x19   : > { %s1303_s6 = scalar_lea.hbm %s1302_s5, 128  ;;  %p1309_p11 = scmp.lt.s32.totalorder %s1302_s5, %s2027_s1 }
  0x1a   : > { %p1304_p7 = scmp.ne.s32.totalorder %s1302_s5, %s1303_s6  ;;  %p1310_p12 = scmp.lt.s32.totalorder %s1308_s9, %s1303_s6 }
  0x1c   : > { %p1306_p9 = pnand %p1305_p8, %p1304_p7  ;;  %p1311_p13 = por %p1310_p12, %p1309_p11 }
  0x1e   : > { %p1307_p10 = pneg %p1306_p9 }
  0x20   : > { %p1312_p1 = pnand %p1311_p13, %p1307_p10 }
  0x22   : > { %1315 = shalt.err (!%p1312_p1)
}
  0x23   : > { %s1463_s17 = smov 512   ;;  %s1464_s18 = smov 256  }
  0x24   : > { %s1465_s20 = smov 16   ;;  %s1560_s22 = sadd.s32 4294967295, %s1461_s15  }
  0x25   : > { %1176 = dma.hbm_to_vmem [thread:$0]  (!%p1539_p6), %s162_s27, 2048, %s164_s29, %s1543_s4, %s1463_s17, %s1464_s18, %s1465_s20  }
  0x26   : > { %s1040_s23 = sadd.s32 4294967294, %s1461_s15   ;;  %p61_p2 = scmp.ne.s32.totalorder %s1453_s13, %s1449_s12 }
  0x27   : > { %p62_p4 = scmp.eq.s32.totalorder %s1560_s22, 0  ;;  %p111_p5 = scmp.eq.s32.totalorder %s1560_s22, 1 }
  0x28   : > { %p117_p7 = scmp.eq.s32.totalorder %s1040_s23, 1  ;;  %p1041_p9 = scmp.ge.s32.totalorder %s1461_s15, 1 }
  0x29   : > { %p1570_p10 = por %p62_p4, %p61_p2  ;;  %p1577_p11 = por %p111_p5, %p55_p0 }
  0x2a   : > { %p1581_p12 = por %p117_p7, %p61_p2  ;;  %p124_p13 = scmp.lt.s32.totalorder %s1461_s15, 3 }
  0x2b   : > { %s2032_s0 = sld [smem:[#allocation13_spill]]  ;;  %s1466_s6 = smov [#allocation2]  }
  0x2c   : > { %p1589_p1 = pnand %p1041_p9, %p124_p13  ;;  %s137_s7 = sshll.u32 %s1466_s6, 4  ;;  %s138_s7 = int_to_ptr.vmem [resolvable:$true] %s137_s7 }
  0x2d   : > { %s1047_s8 = sshll.u32 %s153_s21, 3  ;;  %s1141_s9 = sshll.u32 %s1461_s15, 3 }
  0x2e   : > { %p1169_p0 = pneg %p1589_p1  ;;  %s182_s17 = scalar_lea.hbm %s2022_s2, %s1141_s9 }
  0x2f   : > { %s1467_s18 = smov 128   ;;  %s1468_s20 = smov 8  }
  0x30   : > { %p1170_p2 = pnand %p1169_p0, %p62_p4  ;;  %s184_s23 = sshll.u32 %s182_s17, 4  ;;  %s185_s23 = int_to_ptr.hbm [resolvable:$true] %s184_s23 }
  0x31   : > { %s135_s29 = sshll.u32 %s2032_s0, 4  ;;  %s177_s27 = scalar_lea.vmem [#allocation7], %s1047_s8  ;;  %s136_s29 = int_to_ptr.hbm [resolvable:$true] %s135_s29 }
  0x32   : > { %1172 = dma.hbm_to_vmem [thread:$0]  (!%p1170_p2), %s136_s29, 1024, %s138_s7, [#allocation3], %s1467_s18, %s1467_s18, %s1468_s20  }
  0x33   : > { %s186_s28 = sshll.u32 %s177_s27, 4  ;;  %s1361_s6 = sshra.s32 %s185_s23, 4  ;;  %s187_s28 = int_to_ptr.vmem [resolvable:$true] %s186_s28  ;;  %s1362_s6 = int_to_ptr.hbm [resolvable:$true] %s1361_s6 }
  0x34   : > { %s1363_s0 = scalar_lea.hbm %s1362_s6, 8  ;;  %s1368_s9 = scalar_lea.hbm %s2022_s2, 16 }
  0x35   : > { %p1364_p5 = scmp.ne.s32.totalorder %s1362_s6, %s1363_s0  ;;  %p1369_p13 = scmp.lt.s32.totalorder %s1362_s6, %s2022_s2 }
  0x36   : > { %p1370_p0 = scmp.lt.s32.totalorder %s1368_s9, %s1363_s0 }
  0x37   : > { %p1366_p7 = pnand %p1364_p5, %p1305_p8 }
  0x38   : > { %p1371_p2 = por %p1370_p0, %p1369_p13 }
  0x39   : > { %p1367_p9 = pneg %p1366_p7 }
  0x3b   : > { %p1372_p3 = pnand %p1371_p2, %p1367_p9 }
  0x3d   : > { %1375 = shalt.err (!%p1372_p3)
}
  0x3e   : > { %1179 = dma.hbm_to_vmem [thread:$0]  (!%p1539_p6), %s185_s23, 128, %s187_s28, %s1543_s4  }
  0x3f   : > { %195 = sbr.rel (%p1589_p1) target bundleno = 395 (0x18b), region = 32 }
  0x44   : > { %1436 = dma.done.wait (%p62_p4), [#allocation3], 1024  }
  0x45   : > { %1438 = vsyncadd (%p62_p4), [#allocation3], 4294966272  ;;  %s202_s0 = sand.u32 1, %s1560_s22   ;;  %s1623_s1 = sand.u32 1, %s1453_s13  }
  0x46   : > { %s1052_s30 = sshll.u32 %s1623_s1, 7  ;;  %s203_s29 = scalar_lea.sflag [#allocation6], %s202_s0 }
  0x47   : > { %s1628_s4 = scalar_lea.vmem [#allocation5], %s1052_s30 }
  0x48   : > { %1440 = dma.done.wait (%p1570_p10), %s203_s29, 2176  }
  0x49   : > { %1442 = vsyncadd (%p1570_p10), %s203_s29, 4294965120  ;;  %v1105_v0 = vld [vmem:[%s1628_s4 + $0x60] sm:$0xf]  ;;  %v1156_v1 = vld [vmem:[%s1628_s4 + $0x6c] sm:$0xf0]  ;;  %vm357_vm0 = vcmask 523264  }
  0x4a   : > { %v1154_v2 = vld [vmem:[%s1628_s4 + $0x64] sm:$0xf]  ;;  %v1106_v3 = vor.u32 %v1156_v1, %v1105_v0  ;;  %v1107_v4 = vld [vmem:[%s1628_s4 + $0x70] sm:$0xf0]  ;;  %v1113_v5 = vld [vmem:[%s1628_s4 + $0x68] sm:$0xf] }
  0x4b   : > { %v1157_v6 = vld [vmem:[%s1628_s4 + $0x74] sm:$0xf0]  ;;  %v1110_v7 = vor.u32 %v1154_v2, %v1107_v4  ;;  %v1155_v9 = vld [vmem:[%s1628_s4 + $0x6c] sm:$0xf]  ;;  %v1115_v10 = vld [vmem:[%s1628_s4 + $0x78] sm:$0xf0] }
  0x4c   : > { %v1114_v8 = vor.u32 %v1157_v6, %v1113_v5  ;;  %v1089_v11 = vld [vmem:[%s1628_s4 + $0x40] sm:$0xf]  ;;  %374 = vmatpush.bf16.msra.mxu0 %v1106_v3  ;;  %v1118_v12 = vor.u32 %v1155_v9, %v1115_v10  ;;  %v1152_v13 = vld [vmem:[%s1628_s4 + $0x4c] sm:$0xf0]  ;;  %v1150_v14 = vld [vmem:[%s1628_s4 + $0x44] sm:$0xf] }
  0x4d   : > { %v1091_v15 = vld [vmem:[%s1628_s4 + $0x50] sm:$0xf0]  ;;  %403 = vmatpush.bf16.msra.mxu1 %v1110_v7  ;;  %v1090_v16 = vor.u32 %v1152_v13, %v1089_v11  ;;  %v1097_v18 = vld [vmem:[%s1628_s4 + $0x48] sm:$0xf]  ;;  %v1153_v19 = vld [vmem:[%s1628_s4 + $0x54] sm:$0xf0] }
  0x4e   : > { %432 = vmatpush.bf16.msra.mxu2 %v1114_v8  ;;  %v1094_v17 = vor.u32 %v1150_v14, %v1091_v15  ;;  %v1151_v20 = vld [vmem:[%s1628_s4 + $0x4c] sm:$0xf]  ;;  %461 = vmatpush.bf16.msra.mxu3 %v1118_v12  ;;  %v1098_v21 = vor.u32 %v1153_v19, %v1097_v18  ;;  %v1099_v22 = vld [vmem:[%s1628_s4 + $0x58] sm:$0xf0]  ;;  %v1073_v23 = vld [vmem:[%s1628_s4 + $0x20] sm:$0xf] }
  0x4f   : > { %v1148_v24 = vld [vmem:[%s1628_s4 + $0x2c] sm:$0xf0]  ;;  %v1102_v25 = vor.u32 %v1151_v20, %v1099_v22  ;;  %v1146_v26 = vld [vmem:[%s1628_s4 + $0x24] sm:$0xf]  ;;  %v1075_v27 = vld [vmem:[%s1628_s4 + $0x30] sm:$0xf0] }
  0x50   : > { %v1081_v28 = vld [vmem:[%s1628_s4 + $0x28] sm:$0xf]  ;;  %375 = vmatpush.bf16.msra.mxu0 %v1090_v16  ;;  %v1074_v29 = vor.u32 %v1148_v24, %v1073_v23  ;;  %v1149_v30 = vld [vmem:[%s1628_s4 + $0x34] sm:$0xf0]  ;;  %v1147_v31 = vld [vmem:[%s1628_s4 + $0x2c] sm:$0xf]  ;;  %v1078_v33 = vor.u32 %v1146_v26, %v1075_v27 }
  0x51   : > { %v1083_v32 = vld [vmem:[%s1628_s4 + $0x38] sm:$0xf0]  ;;  %404 = vmatpush.bf16.msra.mxu1 %v1094_v17  ;;  %v1082_v34 = vor.u32 %v1149_v30, %v1081_v28  ;;  %v1057_v35 = vld [vmem:[%s1628_s4] sm:$0xf]  ;;  %v1144_v36 = vld [vmem:[%s1628_s4 + $0xc] sm:$0xf0] }
  0x52   : > { %433 = vmatpush.bf16.msra.mxu2 %v1098_v21  ;;  %v1142_v37 = vld [vmem:[%s1628_s4 + $0x4] sm:$0xf]  ;;  %462 = vmatpush.bf16.msra.mxu3 %v1102_v25  ;;  %v1086_v38 = vor.u32 %v1147_v31, %v1083_v32  ;;  %v1059_v39 = vld [vmem:[%s1628_s4 + $0x10] sm:$0xf0]  ;;  %v1065_v40 = vld [vmem:[%s1628_s4 + $0x8] sm:$0xf]  ;;  %v1058_v44 = vor.u32 %v1144_v36, %v1057_v35 }
  0x53   : > { %v1145_v41 = vld [vmem:[%s1628_s4 + $0x14] sm:$0xf0]  ;;  %v1143_v42 = vld [vmem:[%s1628_s4 + $0xc] sm:$0xf]  ;;  %v1067_v43 = vld [vmem:[%s1628_s4 + $0x18] sm:$0xf0]  ;;  %v1062_v47 = vor.u32 %v1142_v37, %v1059_v39 }
  0x54   : > { %376 = vmatpush.bf16.msra.mxu0 %v1074_v29  ;;  %v249_v45 = vld [vmem:[#allocation2] sm:$0xff]  ;;  %v250_v46 = vld [vmem:[#allocation2 + $0x8] sm:$0xff]  ;;  %v1066_v48 = vor.u32 %v1145_v41, %v1065_v40  ;;  %v1070_v49 = vor.u32 %v1143_v42, %v1067_v43  ;;  %v251_v51 = vld [vmem:[#allocation2 + $0x10] sm:$0xff]  ;;  %s1053_s24 = sshll.u32 %s1623_s1, 3  ;;  %vm588_vm10 = vcmask 1043456   ;;  %s1937_s7 = scalar_lea.vmem [#allocation8], %s1052_s30 }
  0x55   : > { %405 = vmatpush.bf16.msra.mxu1 %v1078_v33  ;;  %v257_v50 = vpack.c.bf16 %v250_v46, %v249_v45  ;;  %v252_v52 = vld [vmem:[#allocation2 + $0x18] sm:$0xff]  ;;  %v253_v54 = vld [vmem:[#allocation2 + $0x20] sm:$0xff]  ;;  %v254_v55 = vld [vmem:[#allocation2 + $0x28] sm:$0xff]  ;;  %s216_s5 = scalar_lea.vmem [#allocation7], %s1053_s24  ;;  %s1158_s8 = sshll.u32 %s1560_s22, 4 }
  0x56   : > { %434 = vmatpush.bf16.msra.mxu2 %v1082_v34  ;;  %463 = vmatpush.bf16.msra.mxu3 %v1086_v38  ;;  %v258_v53 = vpack.c.bf16 %v252_v52, %v251_v51  ;;  %v259_v56 = vpack.c.bf16 %v254_v55, %v253_v54  ;;  %v255_v57 = vld [vmem:[#allocation2 + $0x30] sm:$0xff]  ;;  %v256_v58 = vld [vmem:[#allocation2 + $0x38] sm:$0xff]  ;;  %s1964_s18 = scalar_lea.hbm %s2023_s3, %s1158_s8  ;;  %s932_s20 = sshll.u32 %s1937_s7, 4  ;;  %s1984_s20 = int_to_ptr.vmem [resolvable:$true] %s932_s20 }
  0x57   : > { %v260_v59 = vpack.c.bf16 %v256_v58, %v255_v57  ;;  %s934_s23 = sshll.u32 %s1964_s18, 4  ;;  %s920_s27 = scalar_lea.sflag [#allocation4], %s1623_s1  ;;  %s935_s23 = int_to_ptr.hbm [resolvable:$true] %s934_s23 }
  0x58   : > { %377 = vmatpush.bf16.msra.mxu0 %v1058_v44  ;;  %s1405_s28 = sshra.s32 %s935_s23, 4  ;;  %s1411_s10 = scalar_lea.hbm %s2023_s3, 256  ;;  %s1406_s28 = int_to_ptr.hbm [resolvable:$true] %s1405_s28 }
  0x59   : > { %406 = vmatpush.bf16.msra.mxu1 %v1062_v47  ;;  %s1407_s6 = scalar_lea.hbm %s1406_s28, 128  ;;  %p1412_p4 = scmp.lt.s32.totalorder %s1406_s28, %s2023_s3 }
  0x5a   : > { %435 = vmatpush.bf16.msra.mxu2 %v1066_v48  ;;  %464 = vmatpush.bf16.msra.mxu3 %v1070_v49  ;;  %p1408_p3 = scmp.ne.s32.totalorder %s1406_s28, %s1407_s6  ;;  %p1413_p10 = scmp.lt.s32.totalorder %s1411_s10, %s1407_s6 }
  0x5b   : > { %1119 = vmatmul.msk.bf16.vlgmr.msra.gmra.mxu0 %vm357_vm0, %v257_v50 }
  0x5c   : > { %1123 = vmatmul.msk.bf16.vlgmr.msra.gmra.mxu1 %vm357_vm0, %v257_v50  ;;  %p1409_p6 = pnand %p1408_p3, %p1577_p11  ;;  %p1414_p1 = por %p1413_p10, %p1412_p4 }
  0x5d   : > { %1127 = vmatmul.msk.bf16.vlgmr.msra.gmra.mxu2 %vm357_vm0, %v257_v50  ;;  %1131 = vmatmul.msk.bf16.vlgmr.msra.gmra.mxu3 %vm357_vm0, %v257_v50 }
  0x5e   : > { %p1410_p8 = pneg %p1409_p6 }
  0x60   : > { %p1415_p5 = pnand %p1414_p1, %p1410_p8 }
  0x6b   : > { %1120 = vmatmul.msk.bf16.gmra.mxu0 %vm357_vm0, %v258_v53 }
  0x6c   : > { %1124 = vmatmul.msk.bf16.gmra.mxu1 %vm357_vm0, %v258_v53 }
  0x6d   : > { %1128 = vmatmul.msk.bf16.gmra.mxu2 %vm357_vm0, %v258_v53  ;;  %1132 = vmatmul.msk.bf16.gmra.mxu3 %vm357_vm0, %v258_v53 }
  0x7b   : > { %1121 = vmatmul.msk.bf16.gmra.mxu0 %vm357_vm0, %v259_v56 }
  0x7c   : > { %1125 = vmatmul.msk.bf16.gmra.mxu1 %vm357_vm0, %v259_v56 }
  0x7d   : > { %1129 = vmatmul.msk.bf16.gmra.mxu2 %vm357_vm0, %v259_v56  ;;  %1133 = vmatmul.msk.bf16.gmra.mxu3 %vm357_vm0, %v259_v56 }
  0x8b   : > { %1122 = vmatmul.msk.bf16.gmra.mxu0 %vm357_vm0, %v260_v59 }
  0x8c   : > { %1126 = vmatmul.msk.bf16.gmra.mxu1 %vm357_vm0, %v260_v59 }
  0x8d   : > { %1130 = vmatmul.msk.bf16.gmra.mxu2 %vm357_vm0, %v260_v59  ;;  %1134 = vmatmul.msk.bf16.gmra.mxu3 %vm357_vm0, %v260_v59 }
  0xd8   : > { %v1682_v60 = vpop.f32.mrf.mxu0 }
  0xd9   : > { %v1684_v61 = vpop.f32.mrf.mxu1  ;;  %v513_v14 = vmul.f32 %v1682_v60, %v1682_v60 }
  0xda   : > { %v514_v16 = vmul.f32 %v1684_v61, %v1684_v61 }
  0xe0   : > { %v1686_v62 = vpop.f32.mrf.mxu2  ;;  %v1688_v63 = vpop.f32.mrf.mxu3 }
  0xe1   : > { %v1690_v0 = vpop.f32.mrf.mxu0  ;;  %v1692_v1 = vpop.f32.mrf.mxu1  ;;  %v673_v32 = vmul.f32 %v1686_v62, %v1686_v62  ;;  %v674_v35 = vmul.f32 %v1688_v63, %v1688_v63 }
  0xe2   : > { %v515_v15 = vmul.f32 %v1690_v0, %v1690_v0  ;;  %v516_v17 = vmul.f32 %v1692_v1, %v1692_v1  ;;  %v487_v18 = vadd.f32 %v1690_v0, %v1682_v60  ;;  %v500_v20 = vadd.f32 %v1692_v1, %v1684_v61 }
  0xe4   : > { %v529_v23 = vadd.f32 %v515_v15, %v513_v14  ;;  %v542_v26 = vadd.f32 %v516_v17, %v514_v16 }
  0xe8   : > { %v1694_v2 = vpop.f32.mrf.mxu2  ;;  %v1696_v3 = vpop.f32.mrf.mxu3 }
  0xe9   : > { %v1698_v4 = vpop.f32.mrf.mxu0  ;;  %v1700_v5 = vpop.f32.mrf.mxu1  ;;  %v675_v29 = vmul.f32 %v1694_v2, %v1694_v2  ;;  %v676_v30 = vmul.f32 %v1696_v3, %v1696_v3  ;;  %v647_v39 = vadd.f32 %v1694_v2, %v1686_v62  ;;  %v660_v40 = vadd.f32 %v1696_v3, %v1688_v63 }
  0xea   : > { %v517_v24 = vmul.f32 %v1698_v4, %v1698_v4  ;;  %v518_v27 = vmul.f32 %v1700_v5, %v1700_v5  ;;  %v488_v28 = vadd.f32 %v487_v18, %v1698_v4  ;;  %v501_v31 = vadd.f32 %v500_v20, %v1700_v5 }
  0xeb   : > { %v689_v44 = vadd.f32 %v675_v29, %v673_v32  ;;  %v702_v45 = vadd.f32 %v676_v30, %v674_v35 }
  0xec   : > { %v530_v33 = vadd.f32 %v529_v23, %v517_v24  ;;  %v543_v36 = vadd.f32 %v542_v26, %v518_v27 }
  0xf0   : > { %v1702_v6 = vpop.f32.mrf.mxu2  ;;  %v1704_v7 = vpop.f32.mrf.mxu3 }
  0xf1   : > { %v1706_v8 = vpop.f32.mrf.mxu0  ;;  %v1708_v9 = vpop.f32.mrf.mxu1  ;;  %v677_v37 = vmul.f32 %v1702_v6, %v1702_v6  ;;  %v678_v41 = vmul.f32 %v1704_v7, %v1704_v7  ;;  %v648_v50 = vadd.f32 %v647_v39, %v1702_v6  ;;  %v661_v56 = vadd.f32 %v660_v40, %v1704_v7 }
  0xf2   : > { %v519_v34 = vmul.f32 %v1706_v8, %v1706_v8  ;;  %v520_v38 = vmul.f32 %v1708_v9, %v1708_v9  ;;  %v489_v42 = vadd.f32 %v488_v28, %v1706_v8  ;;  %v502_v46 = vadd.f32 %v501_v31, %v1708_v9 }
  0xf3   : > { %v690_v55 = vadd.f32 %v689_v44, %v677_v37  ;;  %v703_v59 = vadd.f32 %v702_v45, %v678_v41 }
  0xf4   : > { %v531_v51 = vadd.f32 %v530_v33, %v519_v34  ;;  %v544_v57 = vadd.f32 %v543_v36, %v520_v38 }
  0xf8   : > { %v1710_v10 = vpop.f32.mrf.mxu2  ;;  %v1712_v11 = vpop.f32.mrf.mxu3 }
  0xf9   : > { %v1714_v12 = vpop.f32.mrf.mxu0  ;;  %v1716_v13 = vpop.f32.mrf.mxu1  ;;  %v679_v47 = vmul.f32 %v1710_v10, %v1710_v10  ;;  %v680_v52 = vmul.f32 %v1712_v11, %v1712_v11  ;;  %v649_v14 = vadd.f32 %v648_v50, %v1710_v10  ;;  %v662_v18 = vadd.f32 %v661_v56, %v1712_v11 }
  0xfa   : > { %v521_v53 = vmul.f32 %v1714_v12, %v1714_v12  ;;  %v522_v58 = vmul.f32 %v1716_v13, %v1716_v13  ;;  %v490_v15 = vadd.f32 %v489_v42, %v1714_v12  ;;  %v503_v20 = vadd.f32 %v502_v46, %v1716_v13 }
  0xfb   : > { %v691_v17 = vadd.f32 %v690_v55, %v679_v47  ;;  %v704_v24 = vadd.f32 %v703_v59, %v680_v52 }
  0xfc   : > { %v532_v26 = vadd.f32 %v531_v51, %v521_v53  ;;  %v545_v29 = vadd.f32 %v544_v57, %v522_v58 }
 0x100   : > { %v1728_v19 = vpop.f32.mrf.mxu2  ;;  %v1732_v21 = vpop.f32.mrf.mxu3 }
 0x101   : > { %v1734_v22 = vpop.f32.mrf.mxu0  ;;  %v1738_v25 = vpop.f32.mrf.mxu1  ;;  %v681_v30 = vmul.f32 %v1728_v19, %v1728_v19  ;;  %v650_v33 = vadd.f32 %v649_v14, %v1728_v19  ;;  %v682_v34 = vmul.f32 %v1732_v21, %v1732_v21  ;;  %v663_v38 = vadd.f32 %v662_v18, %v1732_v21 }
 0x102   : > { %v523_v16 = vmul.f32 %v1734_v22, %v1734_v22  ;;  %v524_v23 = vmul.f32 %v1738_v25, %v1738_v25  ;;  %v491_v27 = vadd.f32 %v490_v15, %v1734_v22  ;;  %v504_v31 = vadd.f32 %v503_v20, %v1738_v25 }
 0x103   : > { %v692_v52 = vadd.f32 %v691_v17, %v681_v30  ;;  %v705_v57 = vadd.f32 %v704_v24, %v682_v34 }
 0x104   : > { %v533_v35 = vadd.f32 %v532_v26, %v523_v16  ;;  %v546_v39 = vadd.f32 %v545_v29, %v524_v23 }
 0x108   : > { %v1765_v43 = vpop.f32.mrf.mxu2  ;;  %v1770_v48 = vpop.f32.mrf.mxu3 }
 0x109   : > { %v1772_v49 = vpop.f32.mrf.mxu0  ;;  %v1779_v54 = vpop.f32.mrf.mxu1  ;;  %v683_v40 = vmul.f32 %v1765_v43, %v1765_v43  ;;  %v684_v45 = vmul.f32 %v1770_v48, %v1770_v48  ;;  %v651_v15 = vadd.f32 %v650_v33, %v1765_v43  ;;  %v664_v16 = vadd.f32 %v663_v38, %v1770_v48 }
 0x10a   : > { %v525_v28 = vmul.f32 %v1772_v49, %v1772_v49  ;;  %v526_v32 = vmul.f32 %v1779_v54, %v1779_v54  ;;  %v492_v36 = vadd.f32 %v491_v27, %v1772_v49  ;;  %v505_v41 = vadd.f32 %v504_v31, %v1779_v54 }
 0x10b   : > { %v693_v23 = vadd.f32 %v692_v52, %v683_v40  ;;  %v706_v17 = vadd.f32 %v705_v57, %v684_v45 }
 0x10c   : > { %v534_v46 = vadd.f32 %v533_v35, %v525_v28  ;;  %v547_v53 = vadd.f32 %v546_v39, %v526_v32 }
 0x110   : > { %v1804_v37 = vpop.f32.mrf.mxu2  ;;  %v1810_v42 = vpop.f32.mrf.mxu3 }
 0x111   : > { %v1812_v44 = vpop.f32.mrf.mxu0  ;;  %v1819_v51 = vpop.f32.mrf.mxu1  ;;  %v685_v58 = vmul.f32 %v1804_v37, %v1804_v37  ;;  %v652_v28 = vadd.f32 %v651_v15, %v1804_v37  ;;  %v686_v24 = vmul.f32 %v1810_v42, %v1810_v42  ;;  %v665_v32 = vadd.f32 %v664_v16, %v1810_v42 }
 0x112   : > { %v493_v47 = vadd.f32 %v492_v36, %v1812_v44  ;;  %v527_v50 = vmul.f32 %v1812_v44, %v1812_v44  ;;  %2034 = vst [vmem:[#allocation12_spill] sm:$0xff] %v1819_v51  ;;  %v506_v55 = vadd.f32 %v505_v41, %v1819_v51  ;;  %v528_v56 = vmul.f32 %v1819_v51, %v1819_v51 }
 0x113   : > { %v694_v31 = vadd.f32 %v693_v23, %v685_v58  ;;  %v707_v52 = vadd.f32 %v706_v17, %v686_v24 }
 0x114   : > { %v494_v59 = vrot.slane %v493_v47, 4  ;;  %v535_v14 = vadd.f32 %v534_v46, %v527_v50  ;;  %v507_v18 = vrot.slane %v506_v55, 4  ;;  %v548_v20 = vadd.f32 %v547_v53, %v528_v56 }
 0x116   : > { %v495_v26 = vadd.f32 %v494_v59, %v493_v47  ;;  %v536_v27 = vrot.slane %v535_v14, 4  ;;  %v508_v29 = vadd.f32 %v507_v18, %v506_v55  ;;  %v549_v30 = vrot.slane %v548_v20, 4 }
 0x118   : > { %v496_v34 = vrot.slane %v495_v26, 2  ;;  %v537_v33 = vadd.f32 %v536_v27, %v535_v14  ;;  %v1832_v35 = vpop.f32.mrf.mxu2  ;;  %v509_v36 = vrot.slane %v508_v29, 2  ;;  %v550_v38 = vadd.f32 %v549_v30, %v548_v20  ;;  %v1837_v41 = vpop.f32.mrf.mxu3 }
 0x119   : > { %v653_v39 = vadd.f32 %v652_v28, %v1832_v35  ;;  %v687_v40 = vmul.f32 %v1832_v35, %v1832_v35  ;;  %v666_v47 = vadd.f32 %v665_v32, %v1837_v41  ;;  %v688_v50 = vmul.f32 %v1837_v41, %v1837_v41 }
 0x11a   : > { %v497_v45 = vadd.f32 %v496_v34, %v495_v26  ;;  %v538_v46 = vrot.slane %v537_v33, 2  ;;  %v510_v53 = vadd.f32 %v509_v36, %v508_v29  ;;  %v551_v55 = vrot.slane %v550_v38, 2 }
 0x11b   : > { %v654_v56 = vrot.slane %v653_v39, 4  ;;  %v695_v59 = vadd.f32 %v694_v31, %v687_v40  ;;  %v667_v14 = vrot.slane %v666_v47, 4  ;;  %v708_v20 = vadd.f32 %v707_v52, %v688_v50 }
 0x11c   : > { %v498_v57 = vrot.slane %v497_v45, 1  ;;  %v539_v58 = vadd.f32 %v538_v46, %v537_v33  ;;  %v511_v15 = vrot.slane %v510_v53, 1  ;;  %v552_v16 = vadd.f32 %v551_v55, %v550_v38 }
 0x11d   : > { %v655_v18 = vadd.f32 %v654_v56, %v653_v39  ;;  %v696_v27 = vrot.slane %v695_v59, 4  ;;  %v668_v28 = vadd.f32 %v667_v14, %v666_v47  ;;  %v709_v51 = vrot.slane %v708_v20, 4 }
 0x11e   : > { %v499_v23 = vadd.f32 %v498_v57, %v497_v45  ;;  %v540_v26 = vrot.slane %v539_v58, 1  ;;  %v512_v30 = vadd.f32 %v511_v15, %v510_v53  ;;  %v553_v32 = vrot.slane %v552_v16, 1 }
 0x11f   : > { %v656_v34 = vrot.slane %v655_v18, 2  ;;  %v697_v17 = vadd.f32 %v696_v27, %v695_v59  ;;  %v669_v24 = vrot.slane %v668_v28, 2  ;;  %v710_v31 = vadd.f32 %v709_v51, %v708_v20 }
 0x120   : > { %v554_v29 = vadd.f32 %v553_v32, %v552_v16  ;;  %v1842_v36 = vmul.f32 0.015625, %v512_v30  ;;  %v541_v40 = vadd.f32 %v540_v26, %v539_v58  ;;  %v1844_v46 = vmul.f32 0.015625, %v499_v23 }
 0x121   : > { %v657_v33 = vadd.f32 %v656_v34, %v655_v18  ;;  %v698_v38 = vrot.slane %v697_v17, 2  ;;  %v670_v39 = vadd.f32 %v669_v24, %v668_v28  ;;  %v711_v52 = vrot.slane %v710_v31, 2 }
 0x122   : > { %v558_v45 = vmul.f32 0.015625, %v554_v29  ;;  %v560_v47 = vmul.f32 %v1842_v36, %v1842_v36  ;;  %v557_v14 = vmul.f32 0.015625, %v541_v40  ;;  %v559_v51 = vmul.f32 %v1844_v46, %v1844_v46 }
 0x123   : > { %v658_v50 = vrot.slane %v657_v33, 1  ;;  %v699_v53 = vadd.f32 %v698_v38, %v697_v17  ;;  %v671_v55 = vrot.slane %v670_v39, 1  ;;  %v712_v59 = vadd.f32 %v711_v52, %v710_v31 }
 0x124   : > { %v562_v56 = vsub.f32 %v558_v45, %v560_v47  ;;  %v561_v30 = vsub.f32 %v557_v14, %v559_v51 }
 0x125   : > { %v659_v57 = vadd.f32 %v658_v50, %v657_v33  ;;  %v700_v58 = vrot.slane %v699_v53, 1  ;;  %v672_v15 = vadd.f32 %v671_v55, %v670_v39  ;;  %v713_v18 = vrot.slane %v712_v59, 1 }
 0x126   : > { %v564_v20 = vadd.f32 1e-05, %v562_v56  ;;  %v563_v33 = vadd.f32 1e-05, %v561_v30 }
 0x127   : > { %v1850_v16 = vmul.f32 0.015625, %v659_v57  ;;  %v701_v23 = vadd.f32 %v700_v58, %v699_v53  ;;  %v1852_v26 = vmul.f32 0.015625, %v672_v15  ;;  %v714_v28 = vadd.f32 %v713_v18, %v712_v59 }
 0x128   : > { %1229 = vrsqrt.f32 %v564_v20  ;;  %vm581_vm6 = vweird.f32 %v564_v20  ;;  %vm571_vm12 = vweird.f32 %v563_v33 }
 0x129   : > { %v719_v27 = vmul.f32 %v1850_v16, %v1850_v16  ;;  %v717_v32 = vmul.f32 0.015625, %v701_v23  ;;  %v720_v34 = vmul.f32 %v1852_v26, %v1852_v26  ;;  %v718_v17 = vmul.f32 0.015625, %v714_v28 }
 0x12b   : > { %v721_v24 = vsub.f32 %v717_v32, %v719_v27  ;;  %v722_v29 = vsub.f32 %v718_v17, %v720_v34 }
 0x12d   : > { %v723_v31 = vadd.f32 1e-05, %v721_v24  ;;  %v724_v40 = vadd.f32 1e-05, %v722_v29 }
 0x12e   : > { %v1230_v38 = vpop.eup %1229 }
 0x12f   : > { %1231 = vrsqrt.f32 %v723_v31  ;;  %v576_v39 = vmul.f32 %v1230_v38, %v564_v20  ;;  %vm741_vm2 = vweird.f32 %v724_v40  ;;  %vm582_vm3 = vweird.f32 %v1230_v38 }
 0x130   : > { %1233 = vrsqrt.f32 %v724_v40  ;;  %vm583_vm7 = vmor %vm581_vm6, %vm582_vm3  ;;  %vm731_vm8 = vweird.f32 %v723_v31 }
 0x131   : > { %1235 = vrsqrt.f32 %v563_v33  ;;  %v577_v55 = vmul.f32 %v1230_v38, %v576_v39 }
 0x133   : > { %v578_v51 = vmul.f32 0.5, %v577_v55 }
 0x135   : > { %v1232_v45 = vpop.eup %1231  ;;  %v579_v23 = vsub.f32 1.5, %v578_v51 }
 0x136   : > { %v1234_v47 = vpop.eup %1233  ;;  %v726_v50 = vmul.f32 %v1232_v45, %v723_v31  ;;  %vm732_vm5 = vweird.f32 %v1232_v45 }
 0x137   : > { %v1236_v52 = vpop.eup %1235  ;;  %v736_v53 = vmul.f32 %v1234_v47, %v724_v40  ;;  %vm742_vm1 = vweird.f32 %v1234_v47  ;;  %v580_v32 = vmul.f32 %v1230_v38, %v579_v23  ;;  %vm733_vm9 = vmor %vm731_vm8, %vm732_vm5 }
 0x138   : > { %v727_v56 = vmul.f32 %v1232_v45, %v726_v50  ;;  %v566_v59 = vmul.f32 %v1236_v52, %v563_v33  ;;  %vm743_vm4 = vmor %vm741_vm2, %vm742_vm1  ;;  %vm572_vm11 = vweird.f32 %v1236_v52 }
 0x139   : > { %v737_v57 = vmul.f32 %v1234_v47, %v736_v53  ;;  %v584_v39 = vsel %vm583_vm7, %v1230_v38, %v580_v32  ;;  %vm573_vm13 = vmor %vm571_vm12, %vm572_vm11 }
 0x13a   : > { %v728_v58 = vmul.f32 0.5, %v727_v56  ;;  %v567_v18 = vmul.f32 %v1236_v52, %v566_v59  ;;  %v587_v56 = vrot.slane %v584_v39, 4 }
 0x13b   : > { %v738_v14 = vmul.f32 0.5, %v737_v57 }
 0x13c   : > { %v729_v27 = vsub.f32 1.5, %v728_v58  ;;  %v568_v30 = vmul.f32 0.5, %v567_v18 }
 0x13d   : > { %v739_v15 = vsub.f32 1.5, %v738_v14 }
 0x13e   : > { %v730_v34 = vmul.f32 %v1232_v45, %v729_v27  ;;  %v569_v24 = vsub.f32 1.5, %v568_v30 }
 0x13f   : > { %v740_v28 = vmul.f32 %v1234_v47, %v739_v15 }
 0x140   : > { %v734_v50 = vsel %vm733_vm9, %v1232_v45, %v730_v34  ;;  %v570_v40 = vmul.f32 %v1236_v52, %v569_v24 }
 0x141   : > { %v744_v17 = vsel %vm743_vm4, %v1234_v47, %v740_v28  ;;  %v1860_v47 = vld [vmem:[%s216_s5] sm:$0xff] }
 0x142   : > { %v747_v29 = vrot.slane %v744_v17, 4  ;;  %v574_v20 = vsel %vm573_vm13, %v1236_v52, %v570_v40 }
 0x143   : > { %v589_v57 = vsel %vm588_vm10, %v574_v20, %v587_v56 }
 0x144   : > { %v748_v53 = vsel %vm588_vm10, %v734_v50, %v747_v29  ;;  %v1865_v38 = vmul.f32 %v589_v57, %v1860_v47 }
 0x145   : > { %v749_v55 = vrot.slane %v748_v53, 7 }
 0x146   : > { %v594_v51 = vperm.slane %v1865_v38, 4  ;;  %v593_v30 = vperm.slane %v1865_v38, 0 }
 0x147   : > { %v751_v31 = vmul.f32 %v749_v55, %v1860_v47 }
 0x148   : > { %v598_v52 = vmul.f32 %v594_v51, %v1842_v36  ;;  %v597_v36 = vmul.f32 %v593_v30, %v1844_v46 }
 0x149   : > { %v753_v45 = vperm.slane %v751_v31, 1  ;;  %v754_v59 = vperm.slane %v751_v31, 5 }
 0x14a   : > { %v601_v34 = vrot.slane %v598_v52, 4 }
 0x14b   : > { %v758_v14 = vmul.f32 %v754_v59, %v1852_v26  ;;  %v757_v33 = vmul.f32 %v753_v45, %v1850_v16  ;;  %v766_v23 = vperm.slane %v753_v45, 1  ;;  %v767_v28 = vperm.slane %v754_v59, 1 }
 0x14d   : > { %v761_v58 = vrot.slane %v758_v14, 4  ;;  %v768_v17 = vmul.f32 %v766_v23, %v1686_v62  ;;  %v769_v16 = vmul.f32 %v767_v28, %v1688_v63  ;;  %v770_v24 = vmul.f32 %v766_v23, %v1694_v2 }
 0x14e   : > { %v771_v50 = vmul.f32 %v767_v28, %v1696_v3  ;;  %v772_v53 = vmul.f32 %v766_v23, %v1702_v6  ;;  %v773_v20 = vmul.f32 %v767_v28, %v1704_v7  ;;  %v774_v62 = vmul.f32 %v766_v23, %v1710_v10 }
 0x14f   : > { %v762_v15 = vsel %vm588_vm10, %v757_v33, %v761_v58  ;;  %v1887_v2 = vsel %vm588_vm10, %v597_v36, %v601_v34  ;;  %v775_v57 = vmul.f32 %v767_v28, %v1712_v11  ;;  %v776_v46 = vmul.f32 %v766_v23, %v1728_v19 }
 0x150   : > { %v763_v18 = vrot.slane %v762_v15, 5  ;;  %v777_v6 = vmul.f32 %v767_v28, %v1732_v21  ;;  %v778_v7 = vmul.f32 %v766_v23, %v1765_v43  ;;  %v779_v10 = vmul.f32 %v767_v28, %v1770_v48 }
 0x151   : > { %v781_v52 = vmul.f32 %v767_v28, %v1810_v42  ;;  %v782_v19 = vmul.f32 %v766_v23, %v1832_v35  ;;  %v783_v43 = vmul.f32 %v767_v28, %v1837_v41 }
 0x152   : > { %v765_v27 = vsub.f32 %v1860_v47, %v763_v18  ;;  %v780_v18 = vmul.f32 %v766_v23, %v1804_v37 }
 0x154   : > { %v785_v32 = vperm.slane %v765_v27, 3  ;;  %v786_v26 = vperm.slane %v765_v27, 7 }
 0x156   : > { %v789_v29 = vperm.slane %v785_v32, 3  ;;  %v790_v39 = vperm.slane %v786_v26, 3 }
 0x158   : > { %v791_v40 = vadd.f32 %v789_v29, %v768_v17  ;;  %v792_v55 = vadd.f32 %v790_v39, %v769_v16  ;;  %v793_v56 = vadd.f32 %v789_v29, %v770_v24  ;;  %v794_v63 = vadd.f32 %v790_v39, %v771_v50 }
 0x159   : > { %v795_v31 = vadd.f32 %v789_v29, %v772_v53  ;;  %v796_v45 = vadd.f32 %v790_v39, %v773_v20  ;;  %v797_v3 = vadd.f32 %v789_v29, %v774_v62  ;;  %v798_v58 = vadd.f32 %v790_v39, %v775_v57 }
 0x15a   : > { %v807_v59 = vsub.f32 0.0, %v791_v40  ;;  %v808_v14 = vsub.f32 0.0, %v792_v55  ;;  %v809_v33 = vsub.f32 0.0, %v793_v56  ;;  %v810_v15 = vsub.f32 0.0, %v794_v63 }
 0x15b   : > { %v799_v11 = vadd.f32 %v789_v29, %v776_v46  ;;  %v811_v27 = vsub.f32 0.0, %v795_v31  ;;  %v800_v32 = vadd.f32 %v790_v39, %v777_v6  ;;  %v812_v26 = vsub.f32 0.0, %v796_v45 }
 0x15c   : > { %v813_v21 = vsub.f32 0.0, %v797_v3  ;;  %v801_v34 = vadd.f32 %v789_v29, %v778_v7  ;;  %v823_v17 = vmul.f32 1.442695, %v807_v59  ;;  %v825_v16 = vmul.f32 1.442695, %v808_v14 }
 0x15d   : > { %v827_v24 = vmul.f32 1.442695, %v809_v33  ;;  %v802_v48 = vadd.f32 %v790_v39, %v779_v10  ;;  %v814_v36 = vsub.f32 0.0, %v798_v58  ;;  %v829_v50 = vmul.f32 1.442695, %v810_v15 }
 0x15e   : > { %v803_v53 = vadd.f32 %v789_v29, %v780_v18  ;;  %v815_v37 = vsub.f32 0.0, %v799_v11  ;;  %1237 = vpow2.f32 %v823_v17  ;;  %v831_v42 = vmul.f32 1.442695, %v811_v27 }
 0x15f   : > { %v804_v40 = vadd.f32 %v790_v39, %v781_v52  ;;  %v816_v55 = vsub.f32 0.0, %v800_v32  ;;  %1239 = vpow2.f32 %v825_v16  ;;  %v833_v35 = vmul.f32 1.442695, %v812_v26 }
 0x160   : > { %v805_v23 = vadd.f32 %v789_v29, %v782_v19  ;;  %v817_v56 = vsub.f32 0.0, %v801_v34  ;;  %1241 = vpow2.f32 %v827_v24  ;;  %v835_v20 = vmul.f32 1.442695, %v813_v21 }
 0x161   : > { %v806_v62 = vadd.f32 %v790_v39, %v783_v43  ;;  %v818_v63 = vsub.f32 0.0, %v802_v48  ;;  %1243 = vpow2.f32 %v829_v50  ;;  %v837_v31 = vmul.f32 1.442695, %v814_v36 }
 0x162   : > { %v819_v41 = vsub.f32 0.0, %v803_v53  ;;  %1245 = vpow2.f32 %v831_v42  ;;  %v839_v28 = vmul.f32 1.442695, %v815_v37  ;;  %v603_v57 = vrot.slane %v1887_v2, 6 }
 0x163   : > { %v820_v46 = vsub.f32 0.0, %v804_v40  ;;  %1247 = vpow2.f32 %v833_v35  ;;  %v841_v45 = vmul.f32 1.442695, %v816_v55  ;;  %v821_v6 = vsub.f32 0.0, %v805_v23 }
 0x164   : > { %v1238_v3 = vpop.eup %1237  ;;  %1249 = vpow2.f32 %v835_v20  ;;  %v843_v59 = vmul.f32 1.442695, %v817_v56  ;;  %v822_v14 = vsub.f32 0.0, %v806_v62  ;;  %v845_v33 = vmul.f32 1.442695, %v818_v63 }
 0x165   : > { %v1240_v29 = vpop.eup %1239  ;;  %1251 = vpow2.f32 %v837_v31  ;;  %v847_v7 = vmul.f32 1.442695, %v819_v41  ;;  %v605_v58 = vsub.f32 %v1860_v47, %v603_v57  ;;  %v849_v15 = vmul.f32 1.442695, %v820_v46 }
 0x166   : > { %v1242_v39 = vpop.eup %1241  ;;  %1253 = vpow2.f32 %v839_v28  ;;  %v851_v18 = vmul.f32 1.442695, %v821_v6  ;;  %v853_v11 = vmul.f32 1.442695, %v822_v14  ;;  %v1902_v19 = vperm.slane %v593_v30, 0 }
 0x167   : > { %v1244_v10 = vpop.eup %1243  ;;  %1255 = vpow2.f32 %v841_v45  ;;  %v855_v32 = vadd.f32 1.0, %v1238_v3  ;;  %v1906_v21 = vperm.slane %v594_v51, 0  ;;  %v625_v47 = vperm.slane %v605_v58, 2 }
 0x168   : > { %v1246_v2 = vpop.eup %1245  ;;  %1257 = vpow2.f32 %v843_v59  ;;  %v856_v34 = vadd.f32 1.0, %v1240_v29  ;;  %v626_v16 = vperm.slane %v605_v58, 6  ;;  %v857_v24 = vadd.f32 1.0, %v1242_v39 }
 0x169   : > { %v1248_v52 = vpop.eup %1247  ;;  %1259 = vpow2.f32 %v845_v33  ;;  %v858_v48 = vadd.f32 1.0, %v1244_v10  ;;  %v608_v30 = vmul.f32 %v1902_v19, %v1682_v60  ;;  %v859_v50 = vadd.f32 1.0, %v1246_v2 }
 0x16a   : > { %v1250_v27 = vpop.eup %1249  ;;  %1261 = vpow2.f32 %v847_v7  ;;  %v609_v38 = vmul.f32 %v1906_v21, %v1684_v61  ;;  %v1912_v51 = vperm.slane %v625_v47, 2  ;;  %v860_v37 = vadd.f32 1.0, %v1248_v52 }
 0x16b   : > { %v1252_v26 = vpop.eup %1251  ;;  %1263 = vpow2.f32 %v849_v15  ;;  %v610_v40 = vmul.f32 %v1902_v19, %v1690_v0  ;;  %v1916_v55 = vperm.slane %v626_v16, 2  ;;  %v861_v35 = vadd.f32 1.0, %v1250_v27 }
 0x16c   : > { %v1254_v17 = vpop.eup %1253  ;;  %1265 = vpow2.f32 %v851_v18  ;;  %v611_v60 = vmul.f32 %v1906_v21, %v1692_v1  ;;  %v612_v56 = vmul.f32 %v1902_v19, %v1698_v4  ;;  %v862_v61 = vadd.f32 1.0, %v1252_v26 }
 0x16d   : > { %v1256_v43 = vpop.eup %1255  ;;  %1267 = vpow2.f32 %v853_v11  ;;  %v613_v62 = vmul.f32 %v1906_v21, %v1700_v5  ;;  %v614_v0 = vmul.f32 %v1902_v19, %v1706_v8  ;;  %v863_v63 = vadd.f32 1.0, %v1254_v17 }
 0x16e   : > { %v1258_v36 = vpop.eup %1257  ;;  %1269 = vrcp.f32 %v855_v32  ;;  %v615_v41 = vmul.f32 %v1906_v21, %v1708_v9  ;;  %v631_v1 = vadd.f32 %v1912_v51, %v608_v30  ;;  %v864_v28 = vadd.f32 1.0, %v1256_v43 }
 0x16f   : > { %v1260_v53 = vpop.eup %1259  ;;  %1271 = vrcp.f32 %v856_v34  ;;  %v616_v57 = vmul.f32 %v1902_v19, %v1714_v12  ;;  %v632_v46 = vadd.f32 %v1916_v55, %v609_v38  ;;  %v865_v5 = vadd.f32 1.0, %v1258_v36 }
 0x170   : > { %v1262_v42 = vpop.eup %1261  ;;  %1273 = vrcp.f32 %v857_v24  ;;  %v633_v45 = vadd.f32 %v1912_v51, %v610_v40  ;;  %v866_v3 = vadd.f32 1.0, %v1260_v53  ;;  %v634_v59 = vadd.f32 %v1916_v55, %v611_v60 }
 0x171   : > { %v1264_v23 = vpop.eup %1263  ;;  %1275 = vrcp.f32 %v858_v48  ;;  %v867_v29 = vadd.f32 1.0, %v1262_v42  ;;  %v635_v12 = vadd.f32 %v1912_v51, %v612_v56  ;;  %v636_v58 = vadd.f32 %v1916_v55, %v613_v62 }
 0x172   : > { %v1266_v20 = vpop.eup %1265  ;;  %1277 = vrcp.f32 %v859_v50  ;;  %v868_v39 = vadd.f32 1.0, %v1264_v23  ;;  %v637_v52 = vadd.f32 %v1912_v51, %v614_v0  ;;  %v617_v26 = vmul.f32 %v1906_v21, %v1716_v13 }
 0x173   : > { %v1268_v31 = vpop.eup %1267  ;;  %1279 = vrcp.f32 %v860_v37  ;;  %v869_v15 = vadd.f32 1.0, %v1266_v20  ;;  %v638_v47 = vadd.f32 %v1916_v55, %v615_v41  ;;  %v618_v16 = vmul.f32 %v1902_v19, %v1734_v22 }
 0x174   : > { %v1270_v4 = vpop.eup %1269  ;;  %1281 = vrcp.f32 %v861_v35  ;;  %v870_v11 = vadd.f32 1.0, %v1268_v31  ;;  %v639_v24 = vadd.f32 %v1912_v51, %v616_v57  ;;  %v619_v13 = vmul.f32 %v1906_v21, %v1738_v25 }
 0x175   : > { %v1272_v8 = vpop.eup %1271  ;;  %1283 = vrcp.f32 %v862_v61  ;;  %v887_v6 = vmul.f32 %v1270_v4, %v631_v1  ;;  %v640_v36 = vadd.f32 %v1916_v55, %v617_v26  ;;  %v620_v22 = vmul.f32 %v1902_v19, %v1772_v49  ;;  %v2035_v61 = vld [vmem:[#allocation12_spill] sm:$0xff] }
 0x176   : > { %v1274_v9 = vpop.eup %1273  ;;  %1285 = vrcp.f32 %v863_v63  ;;  %v888_v14 = vmul.f32 %v1272_v8, %v632_v46  ;;  %v641_v53 = vadd.f32 %v1912_v51, %v618_v16  ;;  %v621_v37 = vmul.f32 %v1906_v21, %v1779_v54 }
 0x177   : > { %v1276_v33 = vpop.eup %1275  ;;  %1287 = vrcp.f32 %v864_v28  ;;  %v889_v7 = vmul.f32 %v1274_v9, %v633_v45  ;;  %903 = vst [vmem:[%s1937_s7] sm:$0xff] %v887_v6  ;;  %v642_v42 = vadd.f32 %v1916_v55, %v619_v13  ;;  %v622_v35 = vmul.f32 %v1902_v19, %v1812_v44 }
 0x178   : > { %v1278_v10 = vpop.eup %1277  ;;  %1289 = vrcp.f32 %v865_v5  ;;  %v890_v2 = vmul.f32 %v1276_v33, %v634_v59  ;;  %904 = vst [vmem:[%s1937_s7 + $0x8] sm:$0xff] %v888_v14  ;;  %v643_v23 = vadd.f32 %v1912_v51, %v620_v22  ;;  %v623_v20 = vmul.f32 %v1906_v21, %v2035_v61 }
 0x179   : > { %v1280_v18 = vpop.eup %1279  ;;  %1291 = vrcp.f32 %v866_v3  ;;  %v891_v27 = vmul.f32 %v1278_v10, %v635_v12  ;;  %905 = vst [vmem:[%s1937_s7 + $0x10] sm:$0xff] %v889_v7  ;;  %v644_v54 = vadd.f32 %v1916_v55, %v621_v37  ;;  %v645_v44 = vadd.f32 %v1912_v51, %v622_v35 }
 0x17a   : > { %v1282_v32 = vpop.eup %1281  ;;  %1293 = vrcp.f32 %v867_v29  ;;  %v892_v34 = vmul.f32 %v1280_v18, %v636_v58  ;;  %906 = vst [vmem:[%s1937_s7 + $0x18] sm:$0xff] %v890_v2  ;;  %v646_v31 = vadd.f32 %v1916_v55, %v623_v20 }
 0x17b   : > { %v1284_v17 = vpop.eup %1283  ;;  %1295 = vrcp.f32 %v868_v39  ;;  %v893_v43 = vmul.f32 %v1282_v32, %v637_v52  ;;  %907 = vst [vmem:[%s1937_s7 + $0x20] sm:$0xff] %v891_v27 }
 0x17c   : > { %v1286_v48 = vpop.eup %1285  ;;  %1297 = vrcp.f32 %v869_v15  ;;  %v894_v30 = vmul.f32 %v1284_v17, %v638_v47  ;;  %908 = vst [vmem:[%s1937_s7 + $0x28] sm:$0xff] %v892_v34 }
 0x17d   : > { %v1288_v50 = vpop.eup %1287  ;;  %1299 = vrcp.f32 %v870_v11  ;;  %v895_v38 = vmul.f32 %v1286_v48, %v639_v24  ;;  %909 = vst [vmem:[%s1937_s7 + $0x30] sm:$0xff] %v893_v43 }
 0x17e   : > { %v1290_v25 = vpop.eup %1289  ;;  %v896_v49 = vmul.f32 %v1288_v50, %v640_v36  ;;  %910 = vst [vmem:[%s1937_s7 + $0x38] sm:$0xff] %v894_v30 }
 0x17f   : > { %v1292_v40 = vpop.eup %1291  ;;  %v897_v60 = vmul.f32 %v1290_v25, %v641_v53  ;;  %911 = vst [vmem:[%s1937_s7 + $0x40] sm:$0xff] %v895_v38 }
 0x180   : > { %v1294_v56 = vpop.eup %1293  ;;  %v898_v62 = vmul.f32 %v1292_v40, %v642_v42  ;;  %912 = vst [vmem:[%s1937_s7 + $0x48] sm:$0xff] %v896_v49 }
 0x181   : > { %v1296_v0 = vpop.eup %1295  ;;  %v899_v19 = vmul.f32 %v1294_v56, %v643_v23  ;;  %913 = vst [vmem:[%s1937_s7 + $0x50] sm:$0xff] %v897_v60 }
 0x182   : > { %v1298_v63 = vpop.eup %1297  ;;  %v900_v41 = vmul.f32 %v1296_v0, %v644_v54  ;;  %914 = vst [vmem:[%s1937_s7 + $0x58] sm:$0xff] %v898_v62 }
 0x183   : > { %v1300_v21 = vpop.eup %1299  ;;  %v901_v1 = vmul.f32 %v1298_v63, %v645_v44  ;;  %915 = vst [vmem:[%s1937_s7 + $0x60] sm:$0xff] %v899_v19 }
 0x184   : > { %v902_v28 = vmul.f32 %v1300_v21, %v646_v31  ;;  %916 = vst [vmem:[%s1937_s7 + $0x68] sm:$0xff] %v900_v41 }
 0x185   : > { %917 = vst [vmem:[%s1937_s7 + $0x70] sm:$0xff] %v901_v1 }
 0x186   : > { %918 = vst [vmem:[%s1937_s7 + $0x78] sm:$0xff] %v902_v28 }
 0x187   : > { %1418 = shalt.err (!%p1415_p5)
}
 0x188   : > { %s1469_s1 = smov 256   ;;  %s1470_s30 = smov 512  }
 0x189   : > { %s1471_s29 = smov 16  }
 0x18a   : > { %1167 = dma.vmem_to_hbm [thread:$0]  (%p1577_p11), %s1984_s20, 2048, %s935_s23, %s920_s27, %s1469_s1, %s1470_s30, %s1471_s29  }
 0x18b PF: > { %s949_s4 = sand.u32 1, %s1449_s12   ;;  %p2036_p7 = scmp.ge.s32.totalorder %s1461_s15, 2 }
 0x18c   : > { %s950_s24 = scalar_lea.sflag [#allocation4], %s949_s4 }
 0x18d   : > { %p1181_p9 = pnand %p2036_p7, %p1581_p12 }
 0x18f   : > { %p1182_p13 = pneg %p1181_p9 }
 0x191   : > { %1444 = dma.done.wait (%p1182_p13), %s950_s24, 2048  }
 0x192   : > { %1446 = vsyncadd (%p1182_p13), %s950_s24, 4294965248  ;;  %p17_p0 = scmp.ge.s32.totalorder %s1513_s16, 4   ;;  %s2037_s12 = smov %s1453_s13 }
 0x193   : > { %s2038_s13 = smov %s1457_s14  ;;  %s2039_s14 = smov %s1524_s19 }
 0x194   : > { %s2040_s15 = smov %s1513_s16  ;;  %19 = sbr.rel (!%p17_p0) target bundleno = 9 (0x9), region = 93 }
 0x199   :  { %956 = vsyncpa [#allocation3], 1 }
 0x19a   :  { %958 = vsyncpa [#allocation3 + $0x1], 1 }
 0x19b   :  { %959 = vsyncpa [#allocation6], 1 }
 0x19c   :  { %961 = vsyncpa [#allocation6 + $0x1], 1 }
 0x19d   :  { %962 = vsyncpa [#allocation4], 1 }
 0x19e   :  { %964 = vsyncpa [#allocation4 + $0x1], 1 }

</bundles_post_ra>
